<compile_context>
chip_gen: v6e
topology: v6e:2x2x1
jax: 0.10.0
libtpu: 0.0.40
codegen_flags: <defaults>
</compile_context>

<pallas_src>
import functools

import jax
import jax.numpy as jnp
from jax.experimental import pallas as pl
from jax.experimental.pallas import tpu as pltpu

DATA_RANGE = 255.0
LANE = 128
ROW_ALIGN = 32            # multiple of the packed sublane tile for f32/bf16/int8
NUM_SHARDS = 2            # leading "parallel" grid axis; 2 TCs on v7x, harmless on 1-TC chips
VMEM_LIMIT_BYTES = 40 * 1024 * 1024
# TODO(synk): gate NUM_SHARDS / block budget on pltpu.get_tpu_info() once the
# per-chip core-count field is confirmed; the unconditional 2-way split is
# correct (and near-free) on single-TensorCore chips.


def _pick_lane_width(f):
    """Largest lane-friendly width (multiple of 128) that divides f, else None."""
    for cand in (1024, 512, 256, 128):
        if f % cand == 0:
            return cand
    return None


def _block_elems(itemsize):
    """Per-input block element count from a ~36 MiB VMEM budget.

    Budget model: 2 inputs x 2 pipeline buffers in native dtype
    (4*itemsize bytes/elem) plus an allowance of ~4 block-sized f32
    temporaries (16 bytes/elem).  Dtype-aware: narrower inputs get
    proportionally more elements per block (fewer grid steps) at the same
    VMEM footprint.
    """
    budget = 36 * 1024 * 1024
    e = budget // (4 * itemsize + 16)
    return max((e // 8192) * 8192, 8192)


# --------------------------------------------------------------------------
# Kernels
# --------------------------------------------------------------------------
def _ssq_single_kernel(o_ref, l_ref, out_ref):
    """Single-shot: whole (rows, W) slab in VMEM, one reduce."""
    d = o_ref[...].astype(jnp.float32) - l_ref[...].astype(jnp.float32)
    out_ref[...] = jnp.sum(d * d, keepdims=True)


def _ssq_chunked_kernel(o_ref, l_ref, out_ref, *, rows, block_rows,
                        blocks_per_shard, num_valid_blocks, ragged):
    """Streaming reduction over (block_rows, W) tiles of a (rows, W) slab.

    Grid is (NUM_SHARDS, blocks_per_shard); each shard accumulates into its
    own resident (8, W) f32 output block (VPU-only adds).  The mask for the
    ragged last block is gated with pl.when so full blocks do no mask work.
    """
    s = pl.program_id(0)          # shard ("parallel" -> a TensorCore on v7x)
    j = pl.program_id(1)          # block within shard ("arbitrary" reduction)

    @pl.when(j == 0)
    def _init():
        out_ref[...] = jnp.zeros_like(out_ref)

    d = o_ref[...].astype(jnp.float32) - l_ref[...].astype(jnp.float32)
    dd = d * d
    w = dd.shape[1]

    def fold(x):
        # (block_rows, W) -> (block_rows//8, 8, W): sublane/lane layout
        # preserved, so the axis-0 sum is plain elementwise vreg adds.
        return jnp.sum(x.reshape(block_rows // 8, 8, w), axis=0)

    if not ragged:
        out_ref[...] += fold(dd)
    else:
        gb = s * blocks_per_shard + j            # global block index (unclamped)

        @pl.when(gb < num_valid_blocks - 1)      # full blocks: no mask work
        def _full():
            out_ref[...] += fold(dd)

        @pl.when(gb == num_valid_blocks - 1)     # last valid block: row mask
        def _partial():
            row0 = (num_valid_blocks - 1) * block_rows
            row_id = row0 + jax.lax.broadcasted_iota(
                jnp.int32, (block_rows, 1), 0)
            out_ref[...] += fold(jnp.where(row_id < rows, dd, 0.0))
        # gb > num_valid_blocks - 1: shard-padding block (index map clamped to
        # an in-bounds duplicate) -> contributes nothing.


# --------------------------------------------------------------------------
# Host-side dispatch
# --------------------------------------------------------------------------
def _sum_sq(o2d, l2d):
    """Sum of squared differences of two equal-shape 2-D arrays (f32 scalar)."""
    rows, width = o2d.shape
    itemsize = o2d.dtype.itemsize
    padded_w = ((width + LANE - 1) // LANE) * LANE       # VMEM lane footprint
    block_rows = max(
        ((_block_elems(itemsize) // padded_w) // ROW_ALIGN) * ROW_ALIGN,
        ROW_ALIGN)
    # TODO(synk): for pathological widths (>~100K) a single 32-row block can
    # exceed the VMEM budget; not reachable for image-shaped inputs.

    if rows <= block_rows:
        # Small input: grid-less single-shot kernel (no pipelining overhead).
        out = pl.pallas_call(
            _ssq_single_kernel,
            out_shape=jax.ShapeDtypeStruct((1, 1), jnp.float32),
            compiler_params=pltpu.CompilerParams(
                vmem_limit_bytes=VMEM_LIMIT_BYTES),
        )(o2d, l2d)
        return out[0, 0]

    num_valid_blocks = (rows + block_rows - 1) // block_rows
    blocks_per_shard = (num_valid_blocks + NUM_SHARDS - 1) // NUM_SHARDS
    ragged = (rows % block_rows != 0) or (num_valid_blocks % NUM_SHARDS != 0)

    kernel = functools.partial(
        _ssq_chunked_kernel, rows=rows, block_rows=block_rows,
        blocks_per_shard=blocks_per_shard, num_valid_blocks=num_valid_blocks,
        ragged=ragged)

    def in_map(s, j):
        # Clamp so shard-padding steps DMA an in-bounds (duplicate) block; the
        # kernel masks their contribution to zero.
        return (jnp.minimum(s * blocks_per_shard + j, num_valid_blocks - 1), 0)

    out = pl.pallas_call(
        kernel,
        out_shape=jax.ShapeDtypeStruct((NUM_SHARDS * 8, width), jnp.float32),
        grid_spec=pltpu.PrefetchScalarGridSpec(
            num_scalar_prefetch=0,
            grid=(NUM_SHARDS, blocks_per_shard),
            in_specs=[
                pl.BlockSpec((block_rows, width), in_map),
                pl.BlockSpec((block_rows, width), in_map),
            ],
            out_specs=pl.BlockSpec((8, width), lambda s, j: (s, 0)),
        ),
        compiler_params=pltpu.CompilerParams(
            dimension_semantics=("parallel", "arbitrary"),
            vmem_limit_bytes=VMEM_LIMIT_BYTES),
    )(o2d, l2d)
    # TODO(synk): if an xprof check on v7x shows exposed DMA at step
    # boundaries, sweep pipeline_mode=pl.Buffered(3) on the input specs.
    return jnp.sum(out)                       # tiny (16, W) epilogue reduce


def psnr_metric(toutputs, tlabels):
    """Pallas implementation of PSNRMetric.forward. Returns a Python float."""
    assert toutputs.shape == tlabels.shape
    assert toutputs.ndim == 4
    n, c, h, w = toutputs.shape
    assert n == 1, "PSNRMetric.forward calls .item(); batch must be 1"

    f = c * h * w
    width = _pick_lane_width(f)
    if width is not None:
        # Free reshape to a lane-dense (rows, W) slab with W a multiple of 128.
        o2d = toutputs.reshape(f // width, width)
        l2d = tlabels.reshape(f // width, width)
    else:
        # C*H*W not a multiple of 128: keep the natural (C*H, W) layout; the
        # kernel uses full-width blocks (always legal).  No HBM copies.
        o2d = toutputs.reshape(c * h, w)
        l2d = tlabels.reshape(c * h, w)

    ssq = _sum_sq(o2d, l2d)

    dr2 = jnp.float32(DATA_RANGE * DATA_RANGE)
    mse = (ssq / jnp.float32(f)) * dr2            # matches torch: mean * 255^2
    psnr = 10.0 * jnp.log10(dr2 / mse)
    return float(psnr)                            # mirrors torch's .item()


def _reference_psnr(toutputs, tlabels):
    dr2 = DATA_RANGE * DATA_RANGE
    mse = jnp.mean(
        (toutputs.astype(jnp.float32) - tlabels.astype(jnp.float32)) ** 2,
        axis=(1, 2, 3)) * dr2
    return 10.0 * jnp.log10(dr2 / mse)


def _check(shape, key):
    k1, k2 = jax.random.split(key)
    x = jax.random.uniform(k1, shape, dtype=jnp.float32)
    y = jax.random.uniform(k2, shape, dtype=jnp.float32)
    got = psnr_metric(x, y)
    jax.block_until_ready(jnp.asarray(got))
    want = float(_reference_psnr(x, y)[0])
    assert abs(got - want) < 1e-3 * max(1.0, abs(want)), (shape, got, want)


if __name__ == "__main__":
    key = jax.random.PRNGKey(0)
    keys = jax.random.split(key, 4)

    # 1) Small NCHW input -> grid-less single-shot kernel (lane-dense path).
    _check((1, 4, 16, 16), keys[0])

    # 2) Larger input -> 2-shard chunked path with a ragged last block AND a
    #    shard-padding (clamped) block: exercises both pl.when mask branches
    #    and the per-shard (8, W) output accumulators.
    _check((1, 3, 1040, 1024), keys[1])

    # 3) C*H*W not a multiple of 128, small -> fallback (C*H, W) single-shot.
    _check((1, 3, 37, 50), keys[2])

    # 4) C*H*W not a multiple of 128, large -> fallback chunked path with a
    #    masked partial block on the second shard (full-width, W=1000, blocks).
    _check((1, 3, 500, 1000), keys[3])

    print("KERNEL_OK")
</pallas_src>

<mosaic_0001>
module attributes {stable_mosaic.version = 11 : i64} {
  func.func @_ssq_single_kernel(%arg0: memref<1x1024xf32, #tpu.memory_space<vmem>>, %arg1: memref<1x1024xf32, #tpu.memory_space<vmem>>, %arg2: memref<1x1xf32, #tpu.memory_space<vmem>>) attributes {dimension_semantics = [], scalar_prefetch = 0 : i64, scratch_operands = 0 : i64, tpu.core_type = #tpu.core_type<tc>} {
    %c0 = arith.constant 0 : index
    %c0_0 = arith.constant 0 : index
    %0 = vector.load %arg0[%c0, %c0_0] : memref<1x1024xf32, #tpu.memory_space<vmem>>, vector<1x1024xf32>
    %c0_1 = arith.constant 0 : index
    %c0_2 = arith.constant 0 : index
    %1 = vector.load %arg1[%c0_1, %c0_2] : memref<1x1024xf32, #tpu.memory_space<vmem>>, vector<1x1024xf32>
    %2 = arith.subf %0, %1 : vector<1x1024xf32>
    %3 = arith.mulf %2, %2 : vector<1x1024xf32>
    %4 = vector.shape_cast %3 : vector<1x1024xf32> to vector<1x1x1024xf32>
    %cst = arith.constant dense<0.000000e+00> : vector<1xf32>
    %5 = vector.multi_reduction <add>, %4, %cst [1, 2] : vector<1x1x1024xf32> to vector<1xf32>
    %6 = vector.shape_cast %5 : vector<1xf32> to vector<1x1x1xf32>
    %7 = vector.extract %6[0, 0, 0] : f32 from vector<1x1x1xf32>
    %8 = vector.broadcast %7 : f32 to vector<1x1xf32>
    %c0_3 = arith.constant 0 : index
    %c0_4 = arith.constant 0 : index
    %9 = vector.load %arg2[%c0_3, %c0_4] : memref<1x1xf32, #tpu.memory_space<vmem>>, vector<1x1xf32>
    tpu.vector_store %arg2[%c0_3, %c0_4], %8 {strides = array<i32>} : memref<1x1xf32, #tpu.memory_space<vmem>>, vector<1x1xf32>,
    return
  }
}

</mosaic_0001>

<bundles_post_ra>
// kernel: tpu_custom_call.1
= control target key start
LH: loop header
LB: loop body
LE: loop exit
PB: predicated region body
PF: predicated region fallthrough
CT: control target
= control target key end

     0   :  { %7 = vsyncpa [#allocation3], 0  ;;  %s231_s0 = inlined_call_operand.hbm [shape: f32[1,1024], index: 0, kind: input, shape index: {}]   ;;  %s232_s1 = inlined_call_operand.hbm [shape: f32[1,1024], index: 1, kind: input, shape index: {}]   ;;  %s233_s2 = inlined_call_operand.hbm [shape: f32[1,1], index: 2, kind: output, shape index: {}]  }
   0x1   :  { %8 = vsyncpa [#allocation6], 0 }
   0x2   :  { %9 = vsyncpa [#allocation4], 0  ;;  %s196_s9 = smov [#allocation2]   ;;  %s197_s11 = smov [#allocation5]  }
   0x3   :  { %s16_s10 = sshll.u32 %s196_s9, 4  ;;  %s26_s12 = sshll.u32 %s197_s11, 4  ;;  %s17_s10 = int_to_ptr.vmem [resolvable:$true] %s16_s10  ;;  %s27_s12 = int_to_ptr.vmem [resolvable:$true] %s26_s12 }
   0x4   :  { %s138_s13 = scalar_lea.vmem %s17_s10, 128  ;;  %p143_p1 = scmp.lt.s32.totalorder %s17_s10, %s17_s10 }
   0x5   :  { %p139_p0 = scmp.ne.s32.totalorder %s17_s10, %s138_s13  ;;  %p144_p2 = scmp.lt.s32.totalorder %s138_s13, %s138_s13 }
   0x7   :  { %p145_p3 = por %p144_p2, %p143_p1 }
   0x9   :  { %p146_p4 = pnand %p145_p3, %p139_p0 }
   0xb   :  { %149 = shalt.err (!%p146_p4)
}
   0xc   :  { %19 = dma.hbm_to_vmem [thread:$0]  %s231_s0, 128, %s17_s10, [#allocation3]  }
   0xd   :  { %s158_s16 = scalar_lea.vmem %s27_s12, 128  ;;  %p163_p6 = scmp.lt.s32.totalorder %s27_s12, %s27_s12 }
   0xe   :  { %p159_p5 = scmp.ne.s32.totalorder %s27_s12, %s158_s16  ;;  %p164_p7 = scmp.lt.s32.totalorder %s158_s16, %s158_s16 }
  0x10   :  { %p165_p8 = por %p164_p7, %p163_p6 }
  0x12   :  { %p166_p9 = pnand %p165_p8, %p159_p5 }
  0x14   :  { %169 = shalt.err (!%p166_p9)
}
  0x15   :  { %29 = dma.hbm_to_vmem [thread:$0]  %s232_s1, 128, %s27_s12, [#allocation6]  }
  0x16   :  { %190 = dma.done.wait [#allocation3], 128  }
  0x17   :  { %191 = vsyncadd [#allocation3], 4294967168 }
  0x18   :  { %192 = dma.done.wait [#allocation6], 128  }
  0x19   :  { %193 = vsyncadd [#allocation6], 4294967168  ;;  %v41_v0 = vlaneseq  ;;  %v36_v2 = vld [vmem:[#allocation2] sm:$0xff]  ;;  %v37_v3 = vld [vmem:[#allocation5] sm:$0xff]  ;;  %vm81_vm0 = vcmask 1040384   ;;  %s198_s0 = smov [#allocation7]  }
  0x1a   :  { %v38_v5 = vsub.f32 %v36_v2, %v37_v3  ;;  %s115_s1 = sshll.u32 %s198_s0, 4  ;;  %vm107_vm1 = vcmask 0   ;;  %s116_s1 = int_to_ptr.vmem [resolvable:$true] %s115_s1 }
  0x1b   :  { %v42_v1 = vshrl.u32 %v41_v0, 7  ;;  %s170_s20 = scalar_lea.vmem %s116_s1, 16  ;;  %s174_s21 = scalar_lea.vmem %s116_s1, 32 }
  0x1c   :  { %v39_v9 = vmul.f32 %v38_v5, %v38_v5  ;;  %p171_p10 = scmp.ne.s32.totalorder %s116_s1, %s170_s20  ;;  %p175_p11 = scmp.lt.s32.totalorder %s116_s1, %s116_s1 }
  0x1d   :  { %v43_v4 = vsub.s32 0, %v42_v1  ;;  %v47_v6 = vsub.s32 1, %v42_v1  ;;  %v51_v7 = vsub.s32 2, %v42_v1  ;;  %v55_v8 = vsub.s32 3, %v42_v1  ;;  %p176_p12 = scmp.lt.s32.totalorder %s174_s21, %s170_s20 }
  0x1e   :  { %v59_v10 = vsub.s32 4, %v42_v1  ;;  %v63_v11 = vsub.s32 5, %v42_v1  ;;  %v67_v16 = vsub.s32 6, %v42_v1  ;;  %v71_v23 = vsub.s32 7, %v42_v1 }
  0x1f   :  { %v44_v12 = vrot.slane %v39_v9, %v43_v4  ;;  %v48_v13 = vrot.slane %v39_v9, %v47_v6  ;;  %v52_v14 = vrot.slane %v39_v9, %v51_v7  ;;  %v56_v15 = vrot.slane %v39_v9, %v55_v8  ;;  %p177_p13 = por %p176_p12, %p175_p11 }
  0x20   :  { %v60_v17 = vrot.slane %v39_v9, %v59_v10  ;;  %v64_v22 = vrot.slane %v39_v9, %v63_v11  ;;  %v68_v26 = vrot.slane %v39_v9, %v67_v16  ;;  %v72_v29 = vrot.slane %v39_v9, %v71_v23 }
  0x21   :  { %v82_v18 = vsel %vm81_vm0, %v44_v12, 0.0  ;;  %v83_v19 = vsel %vm81_vm0, %v48_v13, 0.0  ;;  %v85_v20 = vsel %vm81_vm0, %v52_v14, 0.0  ;;  %v87_v24 = vsel %vm81_vm0, %v56_v15, 0.0  ;;  %p178_p0 = pnand %p177_p13, %p171_p10 }
  0x22   :  { %v84_v21 = vadd.f32 %v83_v19, %v82_v18  ;;  %v89_v27 = vsel %vm81_vm0, %v60_v17, 0.0  ;;  %v91_v30 = vsel %vm81_vm0, %v64_v22, 0.0  ;;  %v93_v32 = vsel %vm81_vm0, %v68_v26, 0.0 }
  0x23   :  { %v95_v34 = vsel %vm81_vm0, %v72_v29, 0.0 }
  0x24   :  { %v86_v25 = vadd.f32 %v85_v20, %v84_v21 }
  0x26   :  { %v88_v28 = vadd.f32 %v87_v24, %v86_v25 }
  0x28   :  { %v90_v31 = vadd.f32 %v89_v27, %v88_v28 }
  0x2a   :  { %v92_v33 = vadd.f32 %v91_v30, %v90_v31 }
  0x2c   :  { %v94_v35 = vadd.f32 %v93_v32, %v92_v33 }
  0x2e   :  { %v96_v36 = vadd.f32 %v95_v34, %v94_v35 }
  0x30   :  { %97 = vadd.xlane.f32.xlu0 %v96_v36 }
  0xb9   :  { %v98_v37 = vpop.xlane.xlu0 %97 }
  0xba   :  { %v99_v38 = vrot.slane %v98_v37, 4 }
  0xbc   :  { %v100_v39 = vadd.f32 %v99_v38, %v98_v37 }
  0xbe   :  { %v101_v40 = vrot.slane %v100_v39, 2 }
  0xc0   :  { %v102_v41 = vadd.f32 %v101_v40, %v100_v39 }
  0xc2   :  { %v103_v42 = vrot.slane %v102_v41, 1 }
  0xc4   :  { %v104_v43 = vadd.f32 %v103_v42, %v102_v41 }
  0xc6   :  { %125 = vpush %v104_v43 }
  0xf7   :  { %s126_s19 = spop %125 }
  0xf8   :  { %v106_v44 = vstv %s126_s19 }
  0xf9   :  { %108 = vst.msk [vmem:[#allocation7] sm:$0x1] %vm107_vm1, %v106_v44 }
  0xfa   :  { %181 = shalt.err (!%p178_p0)
}
  0xfb   :  { %118 = dma.vmem_to_hbm [thread:$0]  %s116_s1, 16, %s233_s2, [#allocation4]  }
  0xfc   :  { %194 = dma.done.wait [#allocation4], 16  }
  0xfd   :  { %195 = vsyncadd [#allocation4], 4294967280 }
  0xfe   :  { %122 = vsyncpa [#allocation3], 1 }
  0xff   :  { %123 = vsyncpa [#allocation6], 1 }
 0x100   :  { %124 = vsyncpa [#allocation4], 1 }

</bundles_post_ra>
